<compile_context>
chip_gen: v5e
topology: v5e:2x2
jax: 0.10.0
libtpu: 0.0.40
codegen_flags: <defaults>
</compile_context>

<pallas_src>
import jax
import jax.numpy as jnp
from jax.experimental import pallas as pl
from jax.experimental.pallas import tpu as pltpu

PATCH = 4            # patch size of the (simplified) Swin patch embedding
EMBED_DIM = 32       # per-modality backbone feature dim
MLP_HIDDEN = 64      # per-modality MLP hidden dim
N_CLASSES = 6        # CREMAD
N_CLASSES_PAD = 8    # in-kernel padded class dim (sliced back in the wrapper)
SLAB_W = 128         # packed output slab lane width


# --------------------------------------------------------------------------
# Kernel-side helpers (traced inside the Pallas kernel)
# --------------------------------------------------------------------------
def _ln_half(x):
    mu = jnp.mean(x, axis=-1, keepdims=True)
    var = jnp.mean((x - mu) ** 2, axis=-1, keepdims=True)
    return (x - mu) * jax.lax.rsqrt(var + 1e-5)


def _ln_per_half(z, g, b):
    """LayerNorm applied independently to lanes [0:D] (audio) and [D:2D] (visual)."""
    D = EMBED_DIM
    zn = jnp.concatenate([_ln_half(z[:, :D]), _ln_half(z[:, D:])], axis=-1)
    return zn * g + b


def _gelu_tanh(y):
    # tanh-approx GELU (EUP-friendly).
    # TODO(synk): exact-erf GELU to match nn.GELU default.
    return 0.5 * y * (1.0 + jnp.tanh(0.7978845608028654 * (y + 0.044715 * y * y * y)))


# --------------------------------------------------------------------------
# Fused Pallas kernel: merged (block-diag) backbones + fusion head, one store
# --------------------------------------------------------------------------
def fused_avclassifier_kernel(patches_ref, pool_ref, w_emb_ref, w1_ref, w2_ref,
                              wha_ref, whv_ref, vec_ref, slab_ref):
    D = EMBED_DIM
    D2 = 2 * D
    C2 = 2 * N_CLASSES_PAD

    # (8, 128) f32 vector-parameter slab; static slices are free.
    vp = vec_ref[...]
    b_emb = vp[0:1, 0:D2]
    g1 = vp[1:2, 0:D2]
    be1 = vp[2:3, 0:D2]
    b1 = vp[3:4, :]               # (1, 128): both modalities' MLP-hidden bias
    b2 = vp[4:5, 0:D2]
    g2 = vp[5:6, 0:D2]
    be2 = vp[6:7, 0:D2]
    b_head = vp[7:8, 0:C2]        # (1, 16): [bc(pad 8) | ba+bv(pad 8)]

    # --- merged backbone (both modalities via block-diagonal weights) ---
    # patch embed: (T, 64)bf16 @ (64, 64)bf16 -> (T, 64)f32
    x = jnp.dot(patches_ref[...], w_emb_ref[...],
                preferred_element_type=jnp.float32) + b_emb
    h = _ln_per_half(x, g1, be1)
    # MLP up: (T, 64) @ (64, 128) -> (T, 128)
    y = jnp.dot(h.astype(jnp.bfloat16), w1_ref[...],
                preferred_element_type=jnp.float32) + b1
    y = _gelu_tanh(y)
    # MLP down: (T, 128) @ (128, 64) -> (T, 64)
    y = jnp.dot(y.astype(jnp.bfloat16), w2_ref[...],
                preferred_element_type=jnp.float32) + b2
    x2 = _ln_per_half(x + y, g2, be2)

    # token-mean pooling, reshape-free: (B, T)bf16 @ (T, 64)bf16 -> (B, 64)f32
    feat = jnp.dot(pool_ref[...], x2.astype(jnp.bfloat16),
                   preferred_element_type=jnp.float32)

    # modality_drop with p=[1,1] and use_video_frames==1 is the identity (folded out).
    a = feat[:, 0:D]
    v = feat[:, D:]

    # fused head: one dot per modality covering both `out` and `auxi_out`
    head = (jnp.dot(a.astype(jnp.bfloat16), wha_ref[...],
                    preferred_element_type=jnp.float32)
            + jnp.dot(v.astype(jnp.bfloat16), whv_ref[...],
                      preferred_element_type=jnp.float32)
            + b_head)                                           # (B, 16)

    # per-sample mean / std of the concat feature (feat IS the concat),
    # centered sums for numerical stability, unbiased (torch.std default).
    n = 2.0 * D
    mu = jnp.sum(feat, axis=-1, keepdims=True) / n
    d = feat - mu
    var = jnp.sum(d * d, axis=-1, keepdims=True) / (n - 1.0)
    std = jnp.sqrt(var)

    # single lane-dense (B, 128) store
    pad = jnp.zeros((feat.shape[0], SLAB_W - (D2 + C2 + 2)), jnp.float32)
    slab_ref[...] = jnp.concatenate([feat, head, mu, std, pad], axis=-1)


# --------------------------------------------------------------------------
# Wrapper glue
# --------------------------------------------------------------------------
def _full_spec(shape):
    nd = len(shape)
    return pl.BlockSpec(shape, lambda i, nd=nd: (0,) * nd)


def extract_patches_2d(x_nchw, p):
    """NCHW image -> (B*N, C*p*p) patch tokens (Conv2d patch-embed flatten order)."""
    B, C, H, W = x_nchw.shape
    x = x_nchw.reshape(B, C, H // p, p, W // p, p)
    x = x.transpose(0, 2, 4, 1, 3, 5)                 # (B, Hp, Wp, C, p, p)
    return x.reshape(B * (H // p) * (W // p), C * p * p)


def _blockdiag(wa, wv):
    ra, ca = wa.shape
    rv, cv = wv.shape
    top = jnp.concatenate([wa, jnp.zeros((ra, cv), wa.dtype)], axis=1)
    bot = jnp.concatenate([jnp.zeros((rv, ca), wv.dtype), wv], axis=1)
    return jnp.concatenate([top, bot], axis=0)


def init_params(key):
    ks = jax.random.split(key, 16)
    P = 3 * PATCH * PATCH

    def backbone_params(k0, k1, k2):
        return dict(
            w_emb=0.02 * jax.random.normal(k0, (P, EMBED_DIM), jnp.float32),
            b_emb=jnp.zeros((EMBED_DIM,), jnp.float32),
            ln1_g=jnp.ones((EMBED_DIM,), jnp.float32),
            ln1_b=jnp.zeros((EMBED_DIM,), jnp.float32),
            w1=0.02 * jax.random.normal(k1, (EMBED_DIM, MLP_HIDDEN), jnp.float32),
            b1=jnp.zeros((MLP_HIDDEN,), jnp.float32),
            w2=0.02 * jax.random.normal(k2, (MLP_HIDDEN, EMBED_DIM), jnp.float32),
            b2=jnp.zeros((EMBED_DIM,), jnp.float32),
            ln2_g=jnp.ones((EMBED_DIM,), jnp.float32),
            ln2_b=jnp.zeros((EMBED_DIM,), jnp.float32),
        )

    fusion = dict(
        # NOTE: stored as (in, out); a torch nn.Linear checkpoint (out, in) needs a transpose.
        wc=0.02 * jax.random.normal(ks[6], (2 * EMBED_DIM, N_CLASSES), jnp.float32),
        bc=jnp.zeros((N_CLASSES,), jnp.float32),
        wa=0.02 * jax.random.normal(ks[7], (EMBED_DIM, N_CLASSES), jnp.float32),
        ba=jnp.zeros((N_CLASSES,), jnp.float32),
        wv=0.02 * jax.random.normal(ks[8], (EMBED_DIM, N_CLASSES), jnp.float32),
        bv=jnp.zeros((N_CLASSES,), jnp.float32),
    )
    return dict(audio=backbone_params(ks[0], ks[1], ks[2]),
                visual=backbone_params(ks[3], ks[4], ks[5]),
                fusion=fusion)


def avclassifier_swin_forward(audio, visual, params):
    """audio: (B, 1, H, W) NCHW spectrogram, visual: (B, 3, H, W) NCHW frame."""
    B, _, H, W = audio.shape
    N = (H // PATCH) * (W // PATCH)
    D = EMBED_DIM
    pa = PATCH * PATCH
    cls_pad = N_CLASSES_PAD - N_CLASSES

    au = params["audio"]
    vi = params["visual"]
    fu = params["fusion"]

    # torch.repeat_interleave(audio, 3, 1) folded into the audio patch-embed
    # weight (channel blocks are contiguous rows in the (C, p, p) flatten order).
    w_emb_a = au["w_emb"]
    w_emb_a_eff = w_emb_a[0:pa] + w_emb_a[pa:2 * pa] + w_emb_a[2 * pa:3 * pa]   # (16, D)

    # patch tokens, both modalities concatenated along lanes: (B*N, 16+48=64)
    a_patches = extract_patches_2d(audio, PATCH)        # (B*N, 16)
    v_patches = extract_patches_2d(visual, PATCH)       # (B*N, 48)
    patches = jnp.concatenate([a_patches, v_patches], axis=-1).astype(jnp.bfloat16)

    # token-mean pooling matrix: pool[b, b*N + n] = 1/N   (bf16 for the MXU)
    pool = (jnp.repeat(jnp.eye(B, dtype=jnp.float32), N, axis=1) / float(N)
            ).astype(jnp.bfloat16)                       # (B, B*N)

    # block-diagonal merged backbone weights (audio block first, visual second)
    w_emb = _blockdiag(w_emb_a_eff, vi["w_emb"]).astype(jnp.bfloat16)   # (64, 64)
    w1 = _blockdiag(au["w1"], vi["w1"]).astype(jnp.bfloat16)            # (64, 128)
    w2 = _blockdiag(au["w2"], vi["w2"]).astype(jnp.bfloat16)            # (128, 64)

    # fused head weights: per modality, [concat-head cols | auxi cols], classes padded 6->8
    def pad_cls(w):
        return jnp.pad(w, ((0, 0), (0, cls_pad)))

    w_head_a = jnp.concatenate([pad_cls(fu["wc"][:D]), pad_cls(fu["wa"])],
                               axis=1).astype(jnp.bfloat16)             # (32, 16)
    w_head_v = jnp.concatenate([pad_cls(fu["wc"][D:]), pad_cls(fu["wv"])],
                               axis=1).astype(jnp.bfloat16)             # (32, 16)

    # (8, 128) f32 vector-parameter slab
    def row(vecs):
        cat = jnp.concatenate(vecs)
        return jnp.pad(cat, (0, SLAB_W - cat.shape[0]))

    vec = jnp.stack([
        row([au["b_emb"], vi["b_emb"]]),
        row([au["ln1_g"], vi["ln1_g"]]),
        row([au["ln1_b"], vi["ln1_b"]]),
        row([au["b1"], vi["b1"]]),
        row([au["b2"], vi["b2"]]),
        row([au["ln2_g"], vi["ln2_g"]]),
        row([au["ln2_b"], vi["ln2_b"]]),
        row([jnp.pad(fu["bc"], (0, cls_pad)),
             jnp.pad(fu["ba"] + fu["bv"], (0, cls_pad))]),
    ])                                                                  # (8, 128)

    args = [patches, pool, w_emb, w1, w2, w_head_a, w_head_v, vec]

    slab = pl.pallas_call(
        fused_avclassifier_kernel,
        out_shape=jax.ShapeDtypeStruct((B, SLAB_W), jnp.float32),
        grid=(1,),
        in_specs=[_full_spec(a.shape) for a in args],
        out_specs=_full_spec((B, SLAB_W)),
        compiler_params=pltpu.CompilerParams(
            dimension_semantics=("arbitrary",)),
        # TODO(synk): at Swin scale, switch to a token-tiled 'parallel' grid
        # (2 TCs on v7x) with vmem_limit_bytes sized against 64 MiB VMEM.
    )(*args)

    # unpack the lane-dense output slab
    a_out = slab[:, 0:D]
    v_out = slab[:, D:2 * D]
    out = slab[:, 64:64 + N_CLASSES]
    auxi_out = slab[:, 72:72 + N_CLASSES]
    mul = slab[:, 80:81]
    std = slab[:, 81:82]

    # modality_drop deterministic branch: p = [1, 1] for every sample
    p_full = jnp.ones((B, 2, 1, 1, 1), jnp.float32)
    return a_out, v_out, out, auxi_out, mul, std, p_full


if __name__ == "__main__":
    key = jax.random.PRNGKey(0)
    k_params, k_a, k_v = jax.random.split(key, 3)
    params = init_params(k_params)

    B, H, W = 2, 16, 16
    audio = jax.random.normal(k_a, (B, 1, H, W), jnp.float32)    # spectrogram, 1 chan
    visual = jax.random.normal(k_v, (B, 3, H, W), jnp.float32)   # RGB frame

    fwd = jax.jit(avclassifier_swin_forward)
    outs = jax.block_until_ready(fwd(audio, visual, params))

    a, v, out, auxi_out, mul, std, p = outs
    assert a.shape == (B, EMBED_DIM) and v.shape == (B, EMBED_DIM)
    assert out.shape == (B, N_CLASSES) and auxi_out.shape == (B, N_CLASSES)
    assert mul.shape == (B, 1) and std.shape == (B, 1)
    assert p.shape == (B, 2, 1, 1, 1)
    assert all(bool(jnp.all(jnp.isfinite(x))) for x in (a, v, out, auxi_out, mul, std))
    print("KERNEL_OK")
</pallas_src>

<mosaic_0001>
module attributes {stable_mosaic.version = 11 : i64} {
  func.func @fused_avclassifier_kernel(%arg0: i32, %arg1: memref<32x64xbf16, #tpu.memory_space<vmem>>, %arg2: memref<2x32xbf16, #tpu.memory_space<vmem>>, %arg3: memref<64x64xbf16, #tpu.memory_space<vmem>>, %arg4: memref<64x128xbf16, #tpu.memory_space<vmem>>, %arg5: memref<128x64xbf16, #tpu.memory_space<vmem>>, %arg6: memref<32x16xbf16, #tpu.memory_space<vmem>>, %arg7: memref<32x16xbf16, #tpu.memory_space<vmem>>, %arg8: memref<8x128xf32, #tpu.memory_space<vmem>>, %arg9: memref<2x128xf32, #tpu.memory_space<vmem>>) attributes {dimension_semantics = [#tpu.dimension_semantics<arbitrary>], iteration_bounds = array<i64: 1>, scalar_prefetch = 0 : i64, scratch_operands = 0 : i64, tpu.core_type = #tpu.core_type<tc>, window_params = [{pipeline_mode = #tpu.pipeline_mode<synchronous>, transform_indices = @transform_0, window_bounds = array<i64: 32, 64>}, {pipeline_mode = #tpu.pipeline_mode<synchronous>, transform_indices = @transform_1, window_bounds = array<i64: 2, 32>}, {pipeline_mode = #tpu.pipeline_mode<synchronous>, transform_indices = @transform_2, window_bounds = array<i64: 64, 64>}, {pipeline_mode = #tpu.pipeline_mode<synchronous>, transform_indices = @transform_3, window_bounds = array<i64: 64, 128>}, {pipeline_mode = #tpu.pipeline_mode<synchronous>, transform_indices = @transform_4, window_bounds = array<i64: 128, 64>}, {pipeline_mode = #tpu.pipeline_mode<synchronous>, transform_indices = @transform_5, window_bounds = array<i64: 32, 16>}, {pipeline_mode = #tpu.pipeline_mode<synchronous>, transform_indices = @transform_6, window_bounds = array<i64: 32, 16>}, {pipeline_mode = #tpu.pipeline_mode<synchronous>, transform_indices = @transform_7, window_bounds = array<i64: 8, 128>}, {pipeline_mode = #tpu.pipeline_mode<synchronous>, transform_indices = @transform_8, window_bounds = array<i64: 2, 128>}]} {
    %c0 = arith.constant 0 : index
    %c0_0 = arith.constant 0 : index
    %0 = vector.load %arg8[%c0, %c0_0] : memref<8x128xf32, #tpu.memory_space<vmem>>, vector<8x128xf32>
    %1 = vector.extract_strided_slice %0 {offsets = [0, 0], sizes = [1, 64], strides = [1, 1]} : vector<8x128xf32> to vector<1x64xf32>
    %2 = vector.extract_strided_slice %0 {offsets = [1, 0], sizes = [1, 64], strides = [1, 1]} : vector<8x128xf32> to vector<1x64xf32>
    %3 = vector.extract_strided_slice %0 {offsets = [2, 0], sizes = [1, 64], strides = [1, 1]} : vector<8x128xf32> to vector<1x64xf32>
    %4 = vector.extract_strided_slice %0 {offsets = [3, 0], sizes = [1, 128], strides = [1, 1]} : vector<8x128xf32> to vector<1x128xf32>
    %5 = vector.extract_strided_slice %0 {offsets = [4, 0], sizes = [1, 64], strides = [1, 1]} : vector<8x128xf32> to vector<1x64xf32>
    %6 = vector.extract_strided_slice %0 {offsets = [5, 0], sizes = [1, 64], strides = [1, 1]} : vector<8x128xf32> to vector<1x64xf32>
    %7 = vector.extract_strided_slice %0 {offsets = [6, 0], sizes = [1, 64], strides = [1, 1]} : vector<8x128xf32> to vector<1x64xf32>
    %8 = vector.extract_strided_slice %0 {offsets = [7, 0], sizes = [1, 16], strides = [1, 1]} : vector<8x128xf32> to vector<1x16xf32>
    %c0_1 = arith.constant 0 : index
    %c0_2 = arith.constant 0 : index
    %9 = vector.load %arg1[%c0_1, %c0_2] : memref<32x64xbf16, #tpu.memory_space<vmem>>, vector<32x64xbf16>
    %c0_3 = arith.constant 0 : index
    %c0_4 = arith.constant 0 : index
    %10 = vector.load %arg3[%c0_3, %c0_4] : memref<64x64xbf16, #tpu.memory_space<vmem>>, vector<64x64xbf16>
    %cst = arith.constant dense<0.000000e+00> : vector<32x64xf32>
    %11 = tpu.matmul %9, %10, %cst {dimension_numbers = #tpu.dot_dimension_numbers<[1], [0], [0], [1], [0, 0, 1, 1], [], []>} : vector<32x64xbf16>, vector<64x64xbf16>, vector<32x64xf32> -> vector<32x64xf32>
    %12 = vector.broadcast %1 : vector<1x64xf32> to vector<32x64xf32>
    %13 = arith.addf %11, %12 : vector<32x64xf32>
    %14 = vector.extract_strided_slice %13 {offsets = [0, 0], sizes = [32, 32], strides = [1, 1]} : vector<32x64xf32> to vector<32x32xf32>
    %cst_5 = arith.constant dense<0.000000e+00> : vector<32xf32>
    %15 = vector.multi_reduction <add>, %14, %cst_5 [1] : vector<32x32xf32> to vector<32xf32>
    %16 = vector.shape_cast %15 : vector<32xf32> to vector<32x1xf32>
    %cst_6 = arith.constant 3.200000e+01 : f32
    %17 = vector.broadcast %cst_6 : f32 to vector<32x1xf32>
    %18 = arith.divf %16, %17 : vector<32x1xf32>
    %19 = vector.broadcast %18 : vector<32x1xf32> to vector<32x32xf32>
    %20 = arith.subf %14, %19 : vector<32x32xf32>
    %21 = arith.mulf %20, %20 : vector<32x32xf32>
    %cst_7 = arith.constant dense<0.000000e+00> : vector<32xf32>
    %22 = vector.multi_reduction <add>, %21, %cst_7 [1] : vector<32x32xf32> to vector<32xf32>
    %23 = vector.shape_cast %22 : vector<32xf32> to vector<32x1xf32>
    %cst_8 = arith.constant 3.200000e+01 : f32
    %24 = vector.broadcast %cst_8 : f32 to vector<32x1xf32>
    %25 = arith.divf %23, %24 : vector<32x1xf32>
    %26 = vector.broadcast %18 : vector<32x1xf32> to vector<32x32xf32>
    %27 = arith.subf %14, %26 : vector<32x32xf32>
    %cst_9 = arith.constant 9.99999974E-6 : f32
    %28 = vector.broadcast %cst_9 : f32 to vector<32x1xf32>
    %29 = arith.addf %25, %28 : vector<32x1xf32>
    %30 = math.rsqrt %29 : vector<32x1xf32>
    %31 = vector.broadcast %30 : vector<32x1xf32> to vector<32x32xf32>
    %32 = arith.mulf %27, %31 : vector<32x32xf32>
    %33 = vector.extract_strided_slice %13 {offsets = [0, 32], sizes = [32, 32], strides = [1, 1]} : vector<32x64xf32> to vector<32x32xf32>
    %cst_10 = arith.constant dense<0.000000e+00> : vector<32xf32>
    %34 = vector.multi_reduction <add>, %33, %cst_10 [1] : vector<32x32xf32> to vector<32xf32>
    %35 = vector.shape_cast %34 : vector<32xf32> to vector<32x1xf32>
    %cst_11 = arith.constant 3.200000e+01 : f32
    %36 = vector.broadcast %cst_11 : f32 to vector<32x1xf32>
    %37 = arith.divf %35, %36 : vector<32x1xf32>
    %38 = vector.broadcast %37 : vector<32x1xf32> to vector<32x32xf32>
    %39 = arith.subf %33, %38 : vector<32x32xf32>
    %40 = arith.mulf %39, %39 : vector<32x32xf32>
    %cst_12 = arith.constant dense<0.000000e+00> : vector<32xf32>
    %41 = vector.multi_reduction <add>, %40, %cst_12 [1] : vector<32x32xf32> to vector<32xf32>
    %42 = vector.shape_cast %41 : vector<32xf32> to vector<32x1xf32>
    %cst_13 = arith.constant 3.200000e+01 : f32
    %43 = vector.broadcast %cst_13 : f32 to vector<32x1xf32>
    %44 = arith.divf %42, %43 : vector<32x1xf32>
    %45 = vector.broadcast %37 : vector<32x1xf32> to vector<32x32xf32>
    %46 = arith.subf %33, %45 : vector<32x32xf32>
    %cst_14 = arith.constant 9.99999974E-6 : f32
    %47 = vector.broadcast %cst_14 : f32 to vector<32x1xf32>
    %48 = arith.addf %44, %47 : vector<32x1xf32>
    %49 = math.rsqrt %48 : vector<32x1xf32>
    %50 = vector.broadcast %49 : vector<32x1xf32> to vector<32x32xf32>
    %51 = arith.mulf %46, %50 : vector<32x32xf32>
    %52 = tpu.concatenate %32, %51 in 1 : vector<32x32xf32>, vector<32x32xf32> -> vector<32x64xf32>
    %53 = vector.broadcast %2 : vector<1x64xf32> to vector<32x64xf32>
    %54 = arith.mulf %52, %53 : vector<32x64xf32>
    %55 = vector.broadcast %3 : vector<1x64xf32> to vector<32x64xf32>
    %56 = arith.addf %54, %55 : vector<32x64xf32>
    %57 = arith.truncf %56 : vector<32x64xf32> to vector<32x64xbf16>
    %c0_15 = arith.constant 0 : index
    %c0_16 = arith.constant 0 : index
    %58 = vector.load %arg4[%c0_15, %c0_16] : memref<64x128xbf16, #tpu.memory_space<vmem>>, vector<64x128xbf16>
    %cst_17 = arith.constant dense<0.000000e+00> : vector<32x128xf32>
    %59 = tpu.matmul %57, %58, %cst_17 {dimension_numbers = #tpu.dot_dimension_numbers<[1], [0], [0], [1], [0, 0, 1, 1], [], []>} : vector<32x64xbf16>, vector<64x128xbf16>, vector<32x128xf32> -> vector<32x128xf32>
    %60 = vector.broadcast %4 : vector<1x128xf32> to vector<32x128xf32>
    %61 = arith.addf %59, %60 : vector<32x128xf32>
    %cst_18 = arith.constant 5.000000e-01 : f32
    %62 = vector.broadcast %cst_18 : f32 to vector<32x128xf32>
    %63 = arith.mulf %62, %61 : vector<32x128xf32>
    %cst_19 = arith.constant 4.471500e-02 : f32
    %64 = vector.broadcast %cst_19 : f32 to vector<32x128xf32>
    %65 = arith.mulf %64, %61 : vector<32x128xf32>
    %66 = arith.mulf %65, %61 : vector<32x128xf32>
    %67 = arith.mulf %66, %61 : vector<32x128xf32>
    %68 = arith.addf %61, %67 : vector<32x128xf32>
    %cst_20 = arith.constant 0.797884583 : f32
    %69 = vector.broadcast %cst_20 : f32 to vector<32x128xf32>
    %70 = arith.mulf %69, %68 : vector<32x128xf32>
    %71 = math.tanh %70 : vector<32x128xf32>
    %cst_21 = arith.constant 1.000000e+00 : f32
    %72 = vector.broadcast %cst_21 : f32 to vector<32x128xf32>
    %73 = arith.addf %72, %71 : vector<32x128xf32>
    %74 = arith.mulf %63, %73 : vector<32x128xf32>
    %75 = arith.truncf %74 : vector<32x128xf32> to vector<32x128xbf16>
    %c0_22 = arith.constant 0 : index
    %c0_23 = arith.constant 0 : index
    %76 = vector.load %arg5[%c0_22, %c0_23] : memref<128x64xbf16, #tpu.memory_space<vmem>>, vector<128x64xbf16>
    %cst_24 = arith.constant dense<0.000000e+00> : vector<32x64xf32>
    %77 = tpu.matmul %75, %76, %cst_24 {dimension_numbers = #tpu.dot_dimension_numbers<[1], [0], [0], [1], [0, 0, 1, 1], [], []>} : vector<32x128xbf16>, vector<128x64xbf16>, vector<32x64xf32> -> vector<32x64xf32>
    %78 = vector.broadcast %5 : vector<1x64xf32> to vector<32x64xf32>
    %79 = arith.addf %77, %78 : vector<32x64xf32>
    %80 = arith.addf %13, %79 : vector<32x64xf32>
    %81 = vector.extract_strided_slice %80 {offsets = [0, 0], sizes = [32, 32], strides = [1, 1]} : vector<32x64xf32> to vector<32x32xf32>
    %cst_25 = arith.constant dense<0.000000e+00> : vector<32xf32>
    %82 = vector.multi_reduction <add>, %81, %cst_25 [1] : vector<32x32xf32> to vector<32xf32>
    %83 = vector.shape_cast %82 : vector<32xf32> to vector<32x1xf32>
    %cst_26 = arith.constant 3.200000e+01 : f32
    %84 = vector.broadcast %cst_26 : f32 to vector<32x1xf32>
    %85 = arith.divf %83, %84 : vector<32x1xf32>
    %86 = vector.broadcast %85 : vector<32x1xf32> to vector<32x32xf32>
    %87 = arith.subf %81, %86 : vector<32x32xf32>
    %88 = arith.mulf %87, %87 : vector<32x32xf32>
    %cst_27 = arith.constant dense<0.000000e+00> : vector<32xf32>
    %89 = vector.multi_reduction <add>, %88, %cst_27 [1] : vector<32x32xf32> to vector<32xf32>
    %90 = vector.shape_cast %89 : vector<32xf32> to vector<32x1xf32>
    %cst_28 = arith.constant 3.200000e+01 : f32
    %91 = vector.broadcast %cst_28 : f32 to vector<32x1xf32>
    %92 = arith.divf %90, %91 : vector<32x1xf32>
    %93 = vector.broadcast %85 : vector<32x1xf32> to vector<32x32xf32>
    %94 = arith.subf %81, %93 : vector<32x32xf32>
    %cst_29 = arith.constant 9.99999974E-6 : f32
    %95 = vector.broadcast %cst_29 : f32 to vector<32x1xf32>
    %96 = arith.addf %92, %95 : vector<32x1xf32>
    %97 = math.rsqrt %96 : vector<32x1xf32>
    %98 = vector.broadcast %97 : vector<32x1xf32> to vector<32x32xf32>
    %99 = arith.mulf %94, %98 : vector<32x32xf32>
    %100 = vector.extract_strided_slice %80 {offsets = [0, 32], sizes = [32, 32], strides = [1, 1]} : vector<32x64xf32> to vector<32x32xf32>
    %cst_30 = arith.constant dense<0.000000e+00> : vector<32xf32>
    %101 = vector.multi_reduction <add>, %100, %cst_30 [1] : vector<32x32xf32> to vector<32xf32>
    %102 = vector.shape_cast %101 : vector<32xf32> to vector<32x1xf32>
    %cst_31 = arith.constant 3.200000e+01 : f32
    %103 = vector.broadcast %cst_31 : f32 to vector<32x1xf32>
    %104 = arith.divf %102, %103 : vector<32x1xf32>
    %105 = vector.broadcast %104 : vector<32x1xf32> to vector<32x32xf32>
    %106 = arith.subf %100, %105 : vector<32x32xf32>
    %107 = arith.mulf %106, %106 : vector<32x32xf32>
    %cst_32 = arith.constant dense<0.000000e+00> : vector<32xf32>
    %108 = vector.multi_reduction <add>, %107, %cst_32 [1] : vector<32x32xf32> to vector<32xf32>
    %109 = vector.shape_cast %108 : vector<32xf32> to vector<32x1xf32>
    %cst_33 = arith.constant 3.200000e+01 : f32
    %110 = vector.broadcast %cst_33 : f32 to vector<32x1xf32>
    %111 = arith.divf %109, %110 : vector<32x1xf32>
    %112 = vector.broadcast %104 : vector<32x1xf32> to vector<32x32xf32>
    %113 = arith.subf %100, %112 : vector<32x32xf32>
    %cst_34 = arith.constant 9.99999974E-6 : f32
    %114 = vector.broadcast %cst_34 : f32 to vector<32x1xf32>
    %115 = arith.addf %111, %114 : vector<32x1xf32>
    %116 = math.rsqrt %115 : vector<32x1xf32>
    %117 = vector.broadcast %116 : vector<32x1xf32> to vector<32x32xf32>
    %118 = arith.mulf %113, %117 : vector<32x32xf32>
    %119 = tpu.concatenate %99, %118 in 1 : vector<32x32xf32>, vector<32x32xf32> -> vector<32x64xf32>
    %120 = vector.broadcast %6 : vector<1x64xf32> to vector<32x64xf32>
    %121 = arith.mulf %119, %120 : vector<32x64xf32>
    %122 = vector.broadcast %7 : vector<1x64xf32> to vector<32x64xf32>
    %123 = arith.addf %121, %122 : vector<32x64xf32>
    %c0_35 = arith.constant 0 : index
    %c0_36 = arith.constant 0 : index
    %124 = vector.load %arg2[%c0_35, %c0_36] : memref<2x32xbf16, #tpu.memory_space<vmem>>, vector<2x32xbf16>
    %125 = arith.truncf %123 : vector<32x64xf32> to vector<32x64xbf16>
    %cst_37 = arith.constant dense<0.000000e+00> : vector<2x64xf32>
    %126 = tpu.matmul %124, %125, %cst_37 {dimension_numbers = #tpu.dot_dimension_numbers<[1], [0], [0], [1], [0, 0, 1, 1], [], []>} : vector<2x32xbf16>, vector<32x64xbf16>, vector<2x64xf32> -> vector<2x64xf32>
    %127 = vector.extract_strided_slice %126 {offsets = [0, 0], sizes = [2, 32], strides = [1, 1]} : vector<2x64xf32> to vector<2x32xf32>
    %128 = vector.extract_strided_slice %126 {offsets = [0, 32], sizes = [2, 32], strides = [1, 1]} : vector<2x64xf32> to vector<2x32xf32>
    %129 = arith.truncf %127 : vector<2x32xf32> to vector<2x32xbf16>
    %c0_38 = arith.constant 0 : index
    %c0_39 = arith.constant 0 : index
    %130 = vector.load %arg6[%c0_38, %c0_39] : memref<32x16xbf16, #tpu.memory_space<vmem>>, vector<32x16xbf16>
    %cst_40 = arith.constant dense<0.000000e+00> : vector<2x16xf32>
    %131 = tpu.matmul %129, %130, %cst_40 {dimension_numbers = #tpu.dot_dimension_numbers<[1], [0], [0], [1], [0, 0, 1, 1], [], []>} : vector<2x32xbf16>, vector<32x16xbf16>, vector<2x16xf32> -> vector<2x16xf32>
    %132 = arith.truncf %128 : vector<2x32xf32> to vector<2x32xbf16>
    %c0_41 = arith.constant 0 : index
    %c0_42 = arith.constant 0 : index
    %133 = vector.load %arg7[%c0_41, %c0_42] : memref<32x16xbf16, #tpu.memory_space<vmem>>, vector<32x16xbf16>
    %cst_43 = arith.constant dense<0.000000e+00> : vector<2x16xf32>
    %134 = tpu.matmul %132, %133, %cst_43 {dimension_numbers = #tpu.dot_dimension_numbers<[1], [0], [0], [1], [0, 0, 1, 1], [], []>} : vector<2x32xbf16>, vector<32x16xbf16>, vector<2x16xf32> -> vector<2x16xf32>
    %135 = arith.addf %131, %134 : vector<2x16xf32>
    %136 = vector.broadcast %8 : vector<1x16xf32> to vector<2x16xf32>
    %137 = arith.addf %135, %136 : vector<2x16xf32>
    %cst_44 = arith.constant dense<0.000000e+00> : vector<2xf32>
    %138 = vector.multi_reduction <add>, %126, %cst_44 [1] : vector<2x64xf32> to vector<2xf32>
    %139 = vector.shape_cast %138 : vector<2xf32> to vector<2x1xf32>
    %cst_45 = arith.constant 6.400000e+01 : f32
    %140 = vector.broadcast %cst_45 : f32 to vector<2x1xf32>
    %141 = arith.divf %139, %140 : vector<2x1xf32>
    %142 = vector.broadcast %141 : vector<2x1xf32> to vector<2x64xf32>
    %143 = arith.subf %126, %142 : vector<2x64xf32>
    %144 = arith.mulf %143, %143 : vector<2x64xf32>
    %cst_46 = arith.constant dense<0.000000e+00> : vector<2xf32>
    %145 = vector.multi_reduction <add>, %144, %cst_46 [1] : vector<2x64xf32> to vector<2xf32>
    %146 = vector.shape_cast %145 : vector<2xf32> to vector<2x1xf32>
    %cst_47 = arith.constant 6.300000e+01 : f32
    %147 = vector.broadcast %cst_47 : f32 to vector<2x1xf32>
    %148 = arith.divf %146, %147 : vector<2x1xf32>
    %149 = math.sqrt %148 : vector<2x1xf32>
    %cst_48 = arith.constant 0.000000e+00 : f32
    %150 = vector.broadcast %cst_48 : f32 to vector<2x46xf32>
    %151 = tpu.concatenate %126, %137, %141, %149, %150 in 1 : vector<2x64xf32>, vector<2x16xf32>, vector<2x1xf32>, vector<2x1xf32>, vector<2x46xf32> -> vector<2x128xf32>
    %c0_49 = arith.constant 0 : index
    %c0_50 = arith.constant 0 : index
    %152 = vector.load %arg9[%c0_49, %c0_50] : memref<2x128xf32, #tpu.memory_space<vmem>>, vector<2x128xf32>
    tpu.vector_store %arg9[%c0_49, %c0_50], %151 {strides = array<i32>} : memref<2x128xf32, #tpu.memory_space<vmem>>, vector<2x128xf32>,
    return
  }
  func.func @transform_0(%arg0: i32) -> (i32, i32) {
    %c0_i32 = arith.constant 0 : i32
    %c0_i32_0 = arith.constant 0 : i32
    %c0_i32_1 = arith.constant 0 : i32
    return %c0_i32, %c0_i32_0 : i32, i32
  }
  func.func @transform_1(%arg0: i32) -> (i32, i32) {
    %c0_i32 = arith.constant 0 : i32
    %c0_i32_0 = arith.constant 0 : i32
    %c0_i32_1 = arith.constant 0 : i32
    return %c0_i32, %c0_i32_0 : i32, i32
  }
  func.func @transform_2(%arg0: i32) -> (i32, i32) {
    %c0_i32 = arith.constant 0 : i32
    %c0_i32_0 = arith.constant 0 : i32
    %c0_i32_1 = arith.constant 0 : i32
    return %c0_i32, %c0_i32_0 : i32, i32
  }
  func.func @transform_3(%arg0: i32) -> (i32, i32) {
    %c0_i32 = arith.constant 0 : i32
    %c0_i32_0 = arith.constant 0 : i32
    %c0_i32_1 = arith.constant 0 : i32
    return %c0_i32, %c0_i32_0 : i32, i32
  }
  func.func @transform_4(%arg0: i32) -> (i32, i32) {
    %c0_i32 = arith.constant 0 : i32
    %c0_i32_0 = arith.constant 0 : i32
    %c0_i32_1 = arith.constant 0 : i32
    return %c0_i32, %c0_i32_0 : i32, i32
  }
  func.func @transform_5(%arg0: i32) -> (i32, i32) {
    %c0_i32 = arith.constant 0 : i32
    %c0_i32_0 = arith.constant 0 : i32
    %c0_i32_1 = arith.constant 0 : i32
    return %c0_i32, %c0_i32_0 : i32, i32
  }
  func.func @transform_6(%arg0: i32) -> (i32, i32) {
    %c0_i32 = arith.constant 0 : i32
    %c0_i32_0 = arith.constant 0 : i32
    %c0_i32_1 = arith.constant 0 : i32
    return %c0_i32, %c0_i32_0 : i32, i32
  }
  func.func @transform_7(%arg0: i32) -> (i32, i32) {
    %c0_i32 = arith.constant 0 : i32
    %c0_i32_0 = arith.constant 0 : i32
    %c0_i32_1 = arith.constant 0 : i32
    return %c0_i32, %c0_i32_0 : i32, i32
  }
  func.func @transform_8(%arg0: i32) -> (i32, i32) {
    %c0_i32 = arith.constant 0 : i32
    %c0_i32_0 = arith.constant 0 : i32
    %c0_i32_1 = arith.constant 0 : i32
    return %c0_i32, %c0_i32_0 : i32, i32
  }
}

</mosaic_0001>

<bundles_post_ra>
// kernel: avclassifier_swin_forward.1
= control target key start
LH: loop header
LB: loop body
LE: loop exit
PB: predicated region body
PF: predicated region fallthrough
CT: control target
= control target key end

     0   :  { %vm78_vm0 = vcmask 523264   ;;  %vm104_vm1 = vcmask 261120   ;;  %v1056_v28 = vmov 32.0   ;;  %s1058_s25 = smov 64   ;;  %s1490_s2 = inlined_call_operand.vmem [shape: bf16[64,64], index: 2, kind: input, shape index: {}]   ;;  %s1491_s0 = inlined_call_operand.vmem [shape: bf16[32,64], index: 0, kind: input, shape index: {}]   ;;  %s1492_s7 = inlined_call_operand.vmem [shape: f32[8,128], index: 7, kind: input, shape index: {}]   ;;  %s1493_s3 = inlined_call_operand.vmem [shape: bf16[64,128], index: 3, kind: input, shape index: {}]   ;;  %s1494_s4 = inlined_call_operand.vmem [shape: bf16[128,64], index: 4, kind: input, shape index: {}]   ;;  %s1495_s1 = inlined_call_operand.vmem [shape: bf16[2,32], index: 1, kind: input, shape index: {}]   ;;  %s1496_s6 = inlined_call_operand.vmem [shape: bf16[32,16], index: 6, kind: input, shape index: {}]   ;;  %s1497_s5 = inlined_call_operand.vmem [shape: bf16[32,16], index: 5, kind: input, shape index: {}]   ;;  %s1498_s8 = inlined_call_operand.vmem [shape: f32[2,128], index: 8, kind: output, shape index: {}]  }
   0x1   :  { %v984_v0 = vld [vmem:[%s1490_s2 + $0x18] sm:$0xff]  ;;  %v983_v1 = vld [vmem:[%s1490_s2 + $0x10] sm:$0xff]  ;;  %v982_v2 = vld [vmem:[%s1490_s2 + $0x8] sm:$0xff]  ;;  %1006 = vrcp.f32 %v1056_v28 }
   0x2   :  { %89 = vmatpush.bf16.msra.mxu0 %v984_v0  ;;  %v981_v3 = vld [vmem:[%s1490_s2] sm:$0xff]  ;;  %v980_v5 = vld [vmem:[%s1491_s0 + $0x8] sm:$0xff]  ;;  %s1055_s2 = smov 96   ;;  %v987_v28 = vld [vmem:[%s1493_s3 + $0x10] sm:$0xff] }
   0x3   :  { %v979_v4 = vld [vmem:[%s1491_s0] sm:$0xff] }
   0x4   :  { %v1128_v6 = vld [vmem:[%s1492_s7] sm:$0xff] }
   0x5   :  { %v43_v7 = vperm.slane %v1128_v6, 0 }
   0x6   :  { %90 = vmatpush.bf16.msra.mxu0 %v983_v1 }
   0x7   :  { %v1007_v29 = vpop.eup %1006 }
   0x8   :  { %v118_v30 = vmul.f32 32.0, %v1007_v29  ;;  %vm122_vm2 = vweird.f32 %v1007_v29 }
   0xa   :  { %91 = vmatpush.bf16.msra.mxu0 %v982_v2  ;;  %v119_v31 = vsub.f32 1.0, %v118_v30 }
   0xc   :  { %v120_v32 = vmul.f32 %v1007_v29, %v119_v31  ;;  %v986_v31 = vld [vmem:[%s1493_s3 + $0x8] sm:$0xff] }
   0xe   :  { %92 = vmatpush.bf16.msra.mxu0 %v981_v3  ;;  %v121_v33 = vadd.f32 %v1007_v29, %v120_v32 }
  0x10   :  { %v1159_v34 = vsel %vm122_vm2, %v1007_v29, %v121_v33 }
  0x11   :  { %908 = vmatmul.msk.bf16.vlgmr.msra.gmra.mxu0 %vm78_vm0, %v979_v4 }
  0x21   :  { %909 = vmatmul.msk.bf16.gmra.mxu0 %vm78_vm0, %v980_v5 }
  0x8e   :  { %v94_v8 = vpop.f32.mrf.mxu0 }
  0x8f   :  { %v1131_v9 = vadd.f32 %v94_v8, %v43_v7 }
  0x91   :  { %204 = vrot.lane.b32.xlu0 %v1131_v9, %s1055_s2  ;;  %v105_v22 = vsel %vm104_vm1, %v1131_v9, 0.0 }
  0x96   :  { %v96_v10 = vpop.f32.mrf.mxu0 }
  0x97   :  { %v1135_v11 = vadd.f32 %v96_v10, %v43_v7 }
  0x99   :  { %206 = vrot.lane.b32.xlu0 %v1135_v11, %s1055_s2  ;;  %v108_v26 = vsel %vm104_vm1, %v1135_v11, 0.0 }
  0x9e   :  { %v99_v12 = vpop.f32.mrf.mxu0 }
  0x9f   :  { %v1139_v13 = vadd.f32 %v99_v12, %v43_v7 }
  0xa1   :  { %208 = vrot.lane.b32.xlu1 %v1139_v13, %s1055_s2  ;;  %v111_v25 = vsel %vm104_vm1, %v1139_v13, 0.0 }
  0xa6   :  { %v101_v14 = vpop.f32.mrf.mxu0 }
  0xa7   :  { %v1143_v15 = vadd.f32 %v101_v14, %v43_v7 }
  0xa9   :  { %210 = vrot.lane.b32.xlu1 %v1143_v15, %s1055_s2  ;;  %v114_v27 = vsel %vm104_vm1, %v1143_v15, 0.0 }
 0x103   :  { %v205_v16 = vpop.permute.xlu0 %204 }
 0x104   :  { %v216_v17 = vsel %vm104_vm1, %v205_v16, 0.0 }
 0x105   :  { %217 = vadd.xlane.f32.xlu2 %v216_v17 }
 0x10b   :  { %v207_v18 = vpop.permute.xlu0 %206 }
 0x10c   :  { %v219_v19 = vsel %vm104_vm1, %v207_v18, 0.0 }
 0x10d   :  { %220 = vadd.xlane.f32.xlu2 %v219_v19 }
 0x113   :  { %v209_v20 = vpop.permute.xlu1 %208 }
 0x114   :  { %v222_v21 = vsel %vm104_vm1, %v209_v20, 0.0 }
 0x115   :  { %223 = vadd.xlane.f32.xlu0 %v222_v21  ;;  %106 = vadd.xlane.f32.xlu2 %v105_v22 }
 0x11b   :  { %v211_v23 = vpop.permute.xlu1 %210 }
 0x11c   :  { %v225_v24 = vsel %vm104_vm1, %v211_v23, 0.0 }
 0x11d   :  { %226 = vadd.xlane.f32.xlu1 %v225_v24  ;;  %112 = vadd.xlane.f32.xlu0 %v111_v25 }
 0x11e   :  { %109 = vadd.xlane.f32.xlu2 %v108_v26  ;;  %v988_v26 = vld [vmem:[%s1493_s3 + $0x18] sm:$0xff] }
 0x11f   :  { %379 = vmatpush.bf16.msra.mxu1 %v988_v26 }
 0x123   :  { %380 = vmatpush.bf16.msra.mxu1 %v987_v28  ;;  %v1253_v28 = vperm.slane %v1128_v6, 2 }
 0x125   :  { %115 = vadd.xlane.f32.xlu1 %v114_v27 }
 0x127   :  { %381 = vmatpush.bf16.msra.mxu1 %v986_v31 }
 0x178   :  { %v218_v35 = vpop.xlane.xlu2 %217 }
 0x179   :  { %v228_v36 = vmul.f32 %v218_v35, %v1159_v34 }
 0x17b   :  { %v1163_v37 = vsub.f32 %v1131_v9, %v228_v36  ;;  %v985_v36 = vld [vmem:[%s1493_s3] sm:$0xff] }
 0x17c   :  { %382 = vmatpush.bf16.msra.mxu1 %v985_v36 }
 0x17d   :  { %v236_v38 = vmul.f32 %v1163_v37, %v1163_v37 }
 0x17f   :  { %244 = vrot.lane.b32.xlu2 %v236_v38, %s1055_s2 }
 0x180   :  { %v221_v39 = vpop.xlane.xlu2 %220 }
 0x181   :  { %v229_v40 = vmul.f32 %v221_v39, %v1159_v34 }
 0x183   :  { %v1170_v41 = vsub.f32 %v1135_v11, %v229_v40 }
 0x185   :  { %v237_v42 = vmul.f32 %v1170_v41, %v1170_v41 }
 0x187   :  { %246 = vrot.lane.b32.xlu2 %v237_v42, %s1055_s2 }
 0x188   :  { %v224_v43 = vpop.xlane.xlu0 %223  ;;  %v107_v44 = vpop.xlane.xlu2 %106 }
 0x189   :  { %v230_v45 = vmul.f32 %v224_v43, %v1159_v34  ;;  %v124_v46 = vmul.f32 %v1159_v34, %v107_v44 }
 0x18b   :  { %v1178_v47 = vsub.f32 %v1139_v13, %v230_v45  ;;  %v1181_v48 = vsub.f32 %v1131_v9, %v124_v46 }
 0x18d   :  { %v238_v49 = vmul.f32 %v1178_v47, %v1178_v47  ;;  %v132_v50 = vmul.f32 %v1181_v48, %v1181_v48 }
 0x18f   :  { %248 = vrot.lane.b32.xlu2 %v238_v49, %s1055_s2  ;;  %v136_v51 = vsel %vm104_vm1, %v132_v50, 0.0 }
 0x190   :  { %v227_v52 = vpop.xlane.xlu1 %226  ;;  %137 = vadd.xlane.f32.xlu1 %v136_v51  ;;  %v113_v0 = vpop.xlane.xlu0 %112 }
 0x191   :  { %v231_v53 = vmul.f32 %v227_v52, %v1159_v34  ;;  %v110_v61 = vpop.xlane.xlu2 %109  ;;  %v126_v2 = vmul.f32 %v1159_v34, %v113_v0 }
 0x192   :  { %v125_v62 = vmul.f32 %v1159_v34, %v110_v61 }
 0x193   :  { %v1191_v54 = vsub.f32 %v1143_v15, %v231_v53  ;;  %v1212_v4 = vsub.f32 %v1139_v13, %v126_v2 }
 0x194   :  { %v1205_v63 = vsub.f32 %v1135_v11, %v125_v62 }
 0x195   :  { %v239_v55 = vmul.f32 %v1191_v54, %v1191_v54  ;;  %v134_v5 = vmul.f32 %v1212_v4, %v1212_v4 }
 0x196   :  { %v133_v1 = vmul.f32 %v1205_v63, %v1205_v63 }
 0x197   :  { %250 = vrot.lane.b32.xlu0 %v239_v55, %s1055_s2  ;;  %v142_v7 = vsel %vm104_vm1, %v134_v5, 0.0 }
 0x198   :  { %v116_v56 = vpop.xlane.xlu1 %115  ;;  %v139_v3 = vsel %vm104_vm1, %v133_v1, 0.0 }
 0x199   :  { %v127_v57 = vmul.f32 %v1159_v34, %v116_v56 }
 0x19b   :  { %v1198_v58 = vsub.f32 %v1143_v15, %v127_v57 }
 0x19d   :  { %v135_v59 = vmul.f32 %v1198_v58, %v1198_v58 }
 0x19f   :  { %v145_v60 = vsel %vm104_vm1, %v135_v59, 0.0 }
 0x1a0   :  { %146 = vadd.xlane.f32.xlu1 %v145_v60 }
 0x1b8   :  { %140 = vadd.xlane.f32.xlu2 %v139_v3 }
 0x1c1   :  { %143 = vadd.xlane.f32.xlu0 %v142_v7 }
 0x1d9   :  { %v245_v8 = vpop.permute.xlu2 %244 }
 0x1da   :  { %v256_v10 = vsel %vm104_vm1, %v245_v8, 0.0 }
 0x1db   :  { %257 = vadd.xlane.f32.xlu1 %v256_v10 }
 0x1e1   :  { %v247_v12 = vpop.permute.xlu2 %246 }
 0x1e2   :  { %v259_v14 = vsel %vm104_vm1, %v247_v12, 0.0 }
 0x1e3   :  { %260 = vadd.xlane.f32.xlu1 %v259_v14 }
 0x1e9   :  { %v249_v16 = vpop.permute.xlu2 %248 }
 0x1ea   :  { %v262_v17 = vsel %vm104_vm1, %v249_v16, 0.0 }
 0x1eb   :  { %263 = vadd.xlane.f32.xlu1 %v262_v17 }
 0x203   :  { %v138_v20 = vpop.xlane.xlu1 %137 }
 0x204   :  { %v148_v21 = vmul.f32 %v138_v20, %v1159_v34  ;;  %v1244_v20 = vperm.slane %v1128_v6, 1 }
 0x206   :  { %v152_v23 = vadd.f32 1e-05, %v148_v21 }
 0x208   :  { %1008 = vrsqrt.f32 %v152_v23  ;;  %vm162_vm7 = vweird.f32 %v152_v23 }
 0x209   :  { %v251_v18 = vpop.permute.xlu0 %250 }
 0x20a   :  { %v265_v19 = vsel %vm104_vm1, %v251_v18, 0.0 }
 0x20b   :  { %266 = vadd.xlane.f32.xlu1 %v265_v19 }
 0x20e   :  { %v1009_v29 = vpop.eup %1008 }
 0x20f   :  { %v157_v33 = vmul.f32 %v1009_v29, %v152_v23  ;;  %vm163_vm4 = vweird.f32 %v1009_v29 }
 0x210   :  { %vm164_vm8 = vmor %vm162_vm7, %vm163_vm4 }
 0x211   :  { %v158_v39 = vmul.f32 %v1009_v29, %v157_v33 }
 0x213   :  { %v1223_v25 = vpop.xlane.xlu1 %146  ;;  %v159_v45 = vmul.f32 0.5, %v158_v39 }
 0x215   :  { %v160_v52 = vsub.f32 1.5, %v159_v45 }
 0x217   :  { %v161_v59 = vmul.f32 %v1009_v29, %v160_v52 }
 0x219   :  { %v165_v3 = vsel %vm164_vm8, %v1009_v29, %v161_v59 }
 0x21a   :  { %v196_v16 = vmul.f32 %v165_v3, %v1181_v48 }
 0x22b   :  { %v141_v22 = vpop.xlane.xlu2 %140 }
 0x22c   :  { %v149_v24 = vmul.f32 %v141_v22, %v1159_v34  ;;  %v151_v22 = vmul.f32 %v1223_v25, %v1159_v34 }
 0x22e   :  { %v153_v27 = vadd.f32 1e-05, %v149_v24 }
 0x230   :  { %1010 = vrsqrt.f32 %v153_v27  ;;  %vm172_vm10 = vweird.f32 %v153_v27 }
 0x234   :  { %v144_v7 = vpop.xlane.xlu0 %143 }
 0x235   :  { %v150_v17 = vmul.f32 %v144_v7, %v1159_v34 }
 0x236   :  { %v1011_v38 = vpop.eup %1010 }
 0x237   :  { %v167_v40 = vmul.f32 %v1011_v38, %v153_v27  ;;  %vm173_vm9 = vweird.f32 %v1011_v38  ;;  %v154_v48 = vadd.f32 1e-05, %v150_v17 }
 0x238   :  { %vm174_vm12 = vmor %vm172_vm10, %vm173_vm9 }
 0x239   :  { %v168_v49 = vmul.f32 %v1011_v38, %v167_v40 }
 0x23b   :  { %v169_v53 = vmul.f32 0.5, %v168_v49 }
 0x23d   :  { %v170_v60 = vsub.f32 1.5, %v169_v53 }
 0x23f   :  { %v171_v5 = vmul.f32 %v1011_v38, %v170_v60 }
 0x241   :  { %v175_v18 = vsel %vm174_vm12, %v1011_v38, %v171_v5 }
 0x242   :  { %v197_v24 = vmul.f32 %v175_v18, %v1205_v63 }
 0x24e   :  { %v258_v30 = vpop.xlane.xlu1 %257 }
 0x24f   :  { %v268_v32 = vmul.f32 %v258_v30, %v1159_v34  ;;  %v155_v30 = vadd.f32 1e-05, %v151_v22  ;;  %v996_v22 = vld [vmem:[%s1494_s4 + $0x38] sm:$0xff] }
 0x250   :  { %497 = vmatpush.bf16.msra.mxu2 %v996_v22 }
 0x251   :  { %v272_v35 = vadd.f32 1e-05, %v268_v32  ;;  %vm192_vm8 = vweird.f32 %v155_v30 }
 0x253   :  { %1012 = vrsqrt.f32 %v272_v35  ;;  %vm282_vm5 = vweird.f32 %v272_v35 }
 0x256   :  { %v261_v42 = vpop.xlane.xlu1 %260 }
 0x257   :  { %v269_v43 = vmul.f32 %v261_v42, %v1159_v34 }
 0x259   :  { %v1013_v44 = vpop.eup %1012  ;;  %v273_v46 = vadd.f32 1e-05, %v269_v43 }
 0x25a   :  { %v277_v50 = vmul.f32 %v1013_v44, %v272_v35  ;;  %vm283_vm3 = vweird.f32 %v1013_v44 }
 0x25b   :  { %1014 = vrsqrt.f32 %v273_v46  ;;  %vm284_vm6 = vmor %vm282_vm5, %vm283_vm3  ;;  %vm292_vm13 = vweird.f32 %v273_v46  ;;  %vm182_vm5 = vweird.f32 %v154_v48 }
 0x25c   :  { %v278_v51 = vmul.f32 %v1013_v44, %v277_v50 }
 0x25e   :  { %v279_v55 = vmul.f32 0.5, %v278_v51  ;;  %v264_v2 = vpop.xlane.xlu1 %263 }
 0x25f   :  { %v270_v12 = vmul.f32 %v264_v2, %v1159_v34 }
 0x260   :  { %v280_v56 = vsub.f32 1.5, %v279_v55 }
 0x261   :  { %v1015_v57 = vpop.eup %1014  ;;  %v274_v21 = vadd.f32 1e-05, %v270_v12 }
 0x262   :  { %v281_v61 = vmul.f32 %v1013_v44, %v280_v56  ;;  %v287_v62 = vmul.f32 %v1015_v57, %v273_v46  ;;  %vm293_vm11 = vweird.f32 %v1015_v57 }
 0x263   :  { %vm294_vm14 = vmor %vm292_vm13, %vm293_vm11  ;;  %1016 = vrsqrt.f32 %v274_v21  ;;  %vm302_vm3 = vweird.f32 %v274_v21 }
 0x264   :  { %v285_v0 = vsel %vm284_vm6, %v1013_v44, %v281_v61  ;;  %v288_v1 = vmul.f32 %v1015_v57, %v287_v62  ;;  %1018 = vrsqrt.f32 %v154_v48 }
 0x265   :  { %v316_v10 = vmul.f32 %v285_v0, %v1163_v37  ;;  %1020 = vrsqrt.f32 %v155_v30 }
 0x266   :  { %v289_v8 = vmul.f32 0.5, %v288_v1 }
 0x267   :  { %v320_v37 = vsel %vm104_vm1, %v196_v16, %v316_v10 }
 0x268   :  { %v290_v14 = vsub.f32 1.5, %v289_v8  ;;  %v325_v27 = vmul.f32 %v1244_v20, %v320_v37 }
 0x269   :  { %v1017_v33 = vpop.eup %1016 }
 0x26a   :  { %v291_v19 = vmul.f32 %v1015_v57, %v290_v14  ;;  %v330_v25 = vadd.f32 %v1253_v28, %v325_v27  ;;  %v297_v35 = vmul.f32 %v1017_v33, %v274_v21  ;;  %vm303_vm15 = vweird.f32 %v1017_v33 }
 0x26b   :  { %vm304_vm4 = vmor %vm302_vm3, %vm303_vm15  ;;  %v344_v27 = vperm.slane %v1128_v6, 3 }
 0x26c   :  { %v295_v23 = vsel %vm294_vm14, %v1015_v57, %v291_v19  ;;  %v298_v39 = vmul.f32 %v1017_v33, %v297_v35 }
 0x26d   :  { %v317_v26 = vmul.f32 %v295_v23, %v1170_v41  ;;  %v1019_v41 = vpop.eup %1018  ;;  %v992_v23 = vld [vmem:[%s1494_s4 + $0x18] sm:$0xff] }
 0x26e   :  { %v1021_v36 = vpop.eup %1020  ;;  %v177_v38 = vmul.f32 %v1019_v41, %v154_v48  ;;  %v299_v45 = vmul.f32 0.5, %v298_v39  ;;  %vm183_vm2 = vweird.f32 %v1019_v41  ;;  %v990_v48 = vld [vmem:[%s1494_s4 + $0x8] sm:$0xff] }
 0x26f   :  { %v321_v29 = vsel %vm104_vm1, %v197_v24, %v317_v26  ;;  %v187_v40 = vmul.f32 %v1021_v36, %v155_v30  ;;  %vm184_vm6 = vmor %vm182_vm5, %vm183_vm2  ;;  %vm193_vm7 = vweird.f32 %v1021_v36  ;;  %v991_v24 = vld [vmem:[%s1494_s4 + $0x10] sm:$0xff]  ;;  %v989_v26 = vld [vmem:[%s1494_s4] sm:$0xff] }
 0x270   :  { %v326_v31 = vmul.f32 %v1244_v20, %v321_v29  ;;  %v178_v42 = vmul.f32 %v1019_v41, %v177_v38  ;;  %v300_v51 = vsub.f32 1.5, %v299_v45  ;;  %vm194_vm10 = vmor %vm192_vm8, %vm193_vm7 }
 0x271   :  { %v188_v46 = vmul.f32 %v1021_v36, %v187_v40 }
 0x272   :  { %v331_v32 = vadd.f32 %v1253_v28, %v326_v31  ;;  %v179_v50 = vmul.f32 0.5, %v178_v42  ;;  %v301_v55 = vmul.f32 %v1017_v33, %v300_v51 }
 0x273   :  { %v189_v52 = vmul.f32 0.5, %v188_v46 }
 0x274   :  { %v334_v63 = vpack.c.bf16 %v331_v32, %v330_v25  ;;  %v180_v53 = vsub.f32 1.5, %v179_v50  ;;  %v305_v61 = vsel %vm304_vm4, %v1017_v33, %v301_v55 }
 0x275   :  { %v190_v57 = vsub.f32 1.5, %v189_v52  ;;  %v318_v3 = vmul.f32 %v305_v61, %v1178_v47 }
 0x276   :  { %926 = vmatmul.msk.bf16.vlgmr.msra.gmra.mxu1 %vm78_vm0, %v334_v63  ;;  %v181_v59 = vmul.f32 %v1019_v41, %v180_v53 }
 0x277   :  { %v191_v0 = vmul.f32 %v1021_v36, %v190_v57 }
 0x278   :  { %v185_v1 = vsel %vm184_vm6, %v1019_v41, %v181_v59 }
 0x279   :  { %v198_v7 = vmul.f32 %v185_v1, %v1212_v4  ;;  %v195_v8 = vsel %vm194_vm10, %v1021_v36, %v191_v0 }
 0x27a   :  { %v199_v16 = vmul.f32 %v195_v8, %v1198_v58  ;;  %v994_v58 = vld [vmem:[%s1494_s4 + $0x28] sm:$0xff] }
 0x27b   :  { %v322_v12 = vsel %vm104_vm1, %v198_v7, %v318_v3 }
 0x27c   :  { %v327_v18 = vmul.f32 %v1244_v20, %v322_v12 }
 0x27e   :  { %v267_v43 = vpop.xlane.xlu1 %266  ;;  %v332_v21 = vadd.f32 %v1253_v28, %v327_v18 }
 0x27f   :  { %v271_v44 = vmul.f32 %v267_v43, %v1159_v34 }
 0x281   :  { %v275_v49 = vadd.f32 1e-05, %v271_v44 }
 0x283   :  { %1022 = vrsqrt.f32 %v275_v49  ;;  %vm312_vm11 = vweird.f32 %v275_v49 }
 0x289   :  { %v1023_v56 = vpop.eup %1022 }
 0x28a   :  { %v307_v60 = vmul.f32 %v1023_v56, %v275_v49  ;;  %vm313_vm9 = vweird.f32 %v1023_v56 }
 0x28b   :  { %vm314_vm12 = vmor %vm312_vm11, %vm313_vm9 }
 0x28c   :  { %v308_v62 = vmul.f32 %v1023_v56, %v307_v60 }
 0x28e   :  { %v309_v2 = vmul.f32 0.5, %v308_v62 }
 0x290   :  { %v310_v5 = vsub.f32 1.5, %v309_v2 }
 0x292   :  { %v311_v10 = vmul.f32 %v1023_v56, %v310_v5 }
 0x294   :  { %v315_v14 = vsel %vm314_vm12, %v1023_v56, %v311_v10 }
 0x295   :  { %v319_v17 = vmul.f32 %v315_v14, %v1191_v54  ;;  %v995_v54 = vld [vmem:[%s1494_s4 + $0x30] sm:$0xff] }
 0x296   :  { %498 = vmatpush.bf16.msra.mxu2 %v995_v54 }
 0x297   :  { %v323_v47 = vsel %vm104_vm1, %v199_v16, %v319_v17 }
 0x298   :  { %v328_v19 = vmul.f32 %v1244_v20, %v323_v47  ;;  %v993_v20 = vld [vmem:[%s1494_s4 + $0x20] sm:$0xff] }
 0x29a   :  { %v333_v4 = vadd.f32 %v1253_v28, %v328_v19  ;;  %499 = vmatpush.bf16.msra.mxu2 %v994_v58 }
 0x29c   :  { %v335_v37 = vpack.c.bf16 %v333_v4, %v332_v21  ;;  %v448_v21 = vperm.slane %v1128_v6, 4 }
 0x29e   :  { %927 = vmatmul.msk.bf16.gmra.mxu1 %vm78_vm0, %v335_v37  ;;  %500 = vmatpush.bf16.msra.mxu2 %v993_v20 }
 0x2a2   :  { %501 = vmatpush.bf16.msra.mxu2 %v992_v23 }
 0x2a6   :  { %502 = vmatpush.bf16.msra.mxu2 %v991_v24 }
 0x2aa   :  { %503 = vmatpush.bf16.msra.mxu2 %v990_v48 }
 0x2ae   :  { %504 = vmatpush.bf16.msra.mxu2 %v989_v26 }
 0x2f3   :  { %v384_v28 = vpop.f32.mrf.mxu1 }
 0x2f4   :  { %v385_v29 = vadd.f32 %v384_v28, %v344_v27 }
 0x2f6   :  { %v398_v30 = vmul.f32 0.044715, %v385_v29  ;;  %v394_v45 = vmul.f32 0.5, %v385_v29 }
 0x2f8   :  { %v402_v31 = vmul.f32 %v398_v30, %v385_v29 }
 0x2fa   :  { %v406_v25 = vmul.f32 %v402_v31, %v385_v29 }
 0x2fb   :  { %v386_v32 = vpop.f32.mrf.mxu1 }
 0x2fc   :  { %v387_v63 = vadd.f32 %v386_v32, %v344_v27  ;;  %v410_v33 = vadd.f32 %v406_v25, %v385_v29 }
 0x2fe   :  { %v399_v41 = vmul.f32 0.044715, %v387_v63  ;;  %v414_v36 = vmul.f32 0.7978846, %v410_v33  ;;  %v395_v46 = vmul.f32 0.5, %v387_v63 }
 0x300   :  { %v403_v35 = vmul.f32 %v399_v41, %v387_v63  ;;  %1024 = vtanh.f32 %v414_v36 }
 0x302   :  { %v407_v38 = vmul.f32 %v403_v35, %v387_v63 }
 0x304   :  { %v411_v39 = vadd.f32 %v407_v38, %v387_v63 }
 0x306   :  { %v415_v40 = vmul.f32 0.7978846, %v411_v39  ;;  %v1025_v42 = vpop.eup %1024 }
 0x307   :  { %v422_v43 = vadd.f32 1.0, %v1025_v42 }
 0x308   :  { %1026 = vtanh.f32 %v415_v40 }
 0x309   :  { %v426_v50 = vmul.f32 %v422_v43, %v394_v45 }
 0x30e   :  { %v1027_v44 = vpop.eup %1026 }
 0x30f   :  { %v423_v49 = vadd.f32 1.0, %v1027_v44 }
 0x311   :  { %v427_v51 = vmul.f32 %v423_v49, %v395_v46 }
 0x313   :  { %v430_v52 = vpack.c.bf16 %v427_v51, %v426_v50 }
 0x315   :  { %505 = vmatmul.bf16.vlgmr.msra.gmra.mxu2 %v430_v52 }
 0x31b   :  { %v389_v53 = vpop.f32.mrf.mxu1 }
 0x31c   :  { %v390_v55 = vadd.f32 %v389_v53, %v344_v27 }
 0x31e   :  { %v400_v56 = vmul.f32 0.044715, %v390_v55  ;;  %v396_v14 = vmul.f32 0.5, %v390_v55 }
 0x320   :  { %v404_v57 = vmul.f32 %v400_v56, %v390_v55 }
 0x322   :  { %v408_v59 = vmul.f32 %v404_v57, %v390_v55 }
 0x323   :  { %v391_v60 = vpop.f32.mrf.mxu1 }
 0x324   :  { %v392_v61 = vadd.f32 %v391_v60, %v344_v27  ;;  %v412_v62 = vadd.f32 %v408_v59, %v390_v55 }
 0x326   :  { %v401_v0 = vmul.f32 0.044715, %v392_v61  ;;  %v416_v2 = vmul.f32 0.7978846, %v412_v62  ;;  %v397_v16 = vmul.f32 0.5, %v392_v61 }
 0x328   :  { %v405_v1 = vmul.f32 %v401_v0, %v392_v61  ;;  %1028 = vtanh.f32 %v416_v2 }
 0x32a   :  { %v409_v3 = vmul.f32 %v405_v1, %v392_v61 }
 0x32c   :  { %v413_v5 = vadd.f32 %v409_v3, %v392_v61 }
 0x32e   :  { %v417_v7 = vmul.f32 0.7978846, %v413_v5  ;;  %v1029_v8 = vpop.eup %1028 }
 0x32f   :  { %v424_v10 = vadd.f32 1.0, %v1029_v8 }
 0x330   :  { %1030 = vtanh.f32 %v417_v7 }
 0x331   :  { %v428_v18 = vmul.f32 %v424_v10, %v396_v14 }
 0x336   :  { %v1031_v12 = vpop.eup %1030 }
 0x337   :  { %v425_v17 = vadd.f32 1.0, %v1031_v12 }
 0x339   :  { %v429_v47 = vmul.f32 %v425_v17, %v397_v16 }
 0x33b   :  { %v431_v19 = vpack.c.bf16 %v429_v47, %v428_v18 }
 0x33d   :  { %510 = vmatmul.bf16.gmra.mxu2 %v431_v19 }
 0x398   :  { %v506_v4 = vpop.f32.mrf.mxu2 }
 0x399   :  { %v507_v37 = vadd.f32 %v506_v4, %v448_v21 }
 0x39b   :  { %v516_v22 = vadd.f32 %v507_v37, %v1131_v9 }
 0x39d   :  { %612 = vrot.lane.b32.xlu0 %v516_v22, %s1055_s2  ;;  %v520_v30 = vsel %vm104_vm1, %v516_v22, 0.0 }
 0x3a0   :  { %v508_v54 = vpop.f32.mrf.mxu2 }
 0x3a1   :  { %v509_v24 = vadd.f32 %v508_v54, %v448_v21 }
 0x3a3   :  { %v517_v27 = vadd.f32 %v509_v24, %v1135_v11 }
 0x3a5   :  { %v523_v41 = vsel %vm104_vm1, %v517_v27, 0.0 }
 0x3c0   :  { %v511_v58 = vpop.f32.mrf.mxu2 }
 0x3c1   :  { %v512_v20 = vadd.f32 %v511_v58, %v448_v21 }
 0x3c3   :  { %v518_v23 = vadd.f32 %v512_v20, %v1139_v13 }
 0x3c5   :  { %616 = vrot.lane.b32.xlu2 %v518_v23, %s1055_s2  ;;  %v526_v33 = vsel %vm104_vm1, %v518_v23, 0.0 }
 0x3c8   :  { %v513_v48 = vpop.f32.mrf.mxu2 }
 0x3c9   :  { %v514_v26 = vadd.f32 %v513_v48, %v448_v21 }
 0x3cb   :  { %v519_v28 = vadd.f32 %v514_v26, %v1143_v15 }
 0x3cd   :  { %618 = vrot.lane.b32.xlu1 %v519_v28, %s1055_s2  ;;  %614 = vrot.lane.b32.xlu2 %v517_v27, %s1055_s2  ;;  %v529_v15 = vsel %vm104_vm1, %v519_v28, 0.0 }
 0x40f   :  { %v613_v9 = vpop.permute.xlu0 %612 }
 0x410   :  { %v624_v29 = vsel %vm104_vm1, %v613_v9, 0.0 }
 0x411   :  { %625 = vadd.xlane.f32.xlu0 %v624_v29 }
 0x419   :  { %521 = vadd.xlane.f32.xlu0 %v520_v30 }
 0x41f   :  { %v617_v13 = vpop.permute.xlu2 %616 }
 0x420   :  { %v630_v11 = vsel %vm104_vm1, %v617_v13, 0.0 }
 0x427   :  { %v615_v31 = vpop.permute.xlu2 %614 }
 0x428   :  { %v627_v25 = vsel %vm104_vm1, %v615_v31, 0.0 }
 0x429   :  { %628 = vadd.xlane.f32.xlu1 %v627_v25 }
 0x431   :  { %631 = vadd.xlane.f32.xlu1 %v630_v11 }
 0x439   :  { %530 = vadd.xlane.f32.xlu1 %v529_v15 }
 0x43f   :  { %v619_v32 = vpop.permute.xlu1 %618 }
 0x440   :  { %v633_v63 = vsel %vm104_vm1, %v619_v32, 0.0 }
 0x441   :  { %634 = vadd.xlane.f32.xlu2 %v633_v63 }
 0x449   :  { %527 = vadd.xlane.f32.xlu2 %v526_v33 }
 0x451   :  { %524 = vadd.xlane.f32.xlu2 %v523_v41 }
 0x484   :  { %v626_v35 = vpop.xlane.xlu0 %625 }
 0x485   :  { %v636_v36 = vmul.f32 %v626_v35, %v1159_v34 }
 0x487   :  { %v1315_v38 = vsub.f32 %v516_v22, %v636_v36 }
 0x489   :  { %v644_v39 = vmul.f32 %v1315_v38, %v1315_v38 }
 0x48b   :  { %652 = vrot.lane.b32.xlu2 %v644_v39, %s1055_s2 }
 0x48c   :  { %v522_v42 = vpop.xlane.xlu0 %521 }
 0x48d   :  { %v532_v45 = vmul.f32 %v522_v42, %v1159_v34 }
 0x48f   :  { %v1326_v50 = vsub.f32 %v516_v22, %v532_v45 }
 0x491   :  { %v540_v51 = vmul.f32 %v1326_v50, %v1326_v50 }
 0x493   :  { %v544_v52 = vsel %vm104_vm1, %v540_v51, 0.0 }
 0x49c   :  { %v629_v40 = vpop.xlane.xlu1 %628 }
 0x49d   :  { %v637_v57 = vmul.f32 %v629_v40, %v1159_v34 }
 0x49f   :  { %v1339_v60 = vsub.f32 %v517_v27, %v637_v57 }
 0x4a1   :  { %v645_v61 = vmul.f32 %v1339_v60, %v1339_v60 }
 0x4a4   :  { %v632_v43 = vpop.xlane.xlu1 %631 }
 0x4a5   :  { %v638_v44 = vmul.f32 %v632_v43, %v1159_v34 }
 0x4a7   :  { %v1322_v46 = vsub.f32 %v518_v23, %v638_v44 }
 0x4a9   :  { %v646_v49 = vmul.f32 %v1322_v46, %v1322_v46 }
 0x4ab   :  { %656 = vrot.lane.b32.xlu1 %v646_v49, %s1055_s2 }
 0x4ac   :  { %v531_v5 = vpop.xlane.xlu1 %530 }
 0x4ad   :  { %v535_v7 = vmul.f32 %v531_v5, %v1159_v34 }
 0x4af   :  { %v1351_v8 = vsub.f32 %v519_v28, %v535_v7 }
 0x4b1   :  { %v543_v14 = vmul.f32 %v1351_v8, %v1351_v8 }
 0x4b3   :  { %v553_v17 = vsel %vm104_vm1, %v543_v14, 0.0 }
 0x4b4   :  { %v635_v53 = vpop.xlane.xlu2 %634  ;;  %545 = vadd.xlane.f32.xlu2 %v544_v52 }
 0x4b5   :  { %v639_v55 = vmul.f32 %v635_v53, %v1159_v34 }
 0x4b7   :  { %v1333_v56 = vsub.f32 %v519_v28, %v639_v55 }
 0x4b9   :  { %v647_v59 = vmul.f32 %v1333_v56, %v1333_v56 }
 0x4bb   :  { %658 = vrot.lane.b32.xlu0 %v647_v59, %s1055_s2 }
 0x4bc   :  { %v528_v62 = vpop.xlane.xlu2 %527 }
 0x4bd   :  { %v534_v0 = vmul.f32 %v528_v62, %v1159_v34 }
 0x4bf   :  { %v1345_v1 = vsub.f32 %v518_v23, %v534_v0 }
 0x4c1   :  { %v542_v2 = vmul.f32 %v1345_v1, %v1345_v1 }
 0x4c3   :  { %654 = vrot.lane.b32.xlu0 %v645_v61, %s1055_s2  ;;  %v550_v3 = vsel %vm104_vm1, %v542_v2, 0.0 }
 0x4c4   :  { %v525_v10 = vpop.xlane.xlu2 %524 }
 0x4c5   :  { %v533_v12 = vmul.f32 %v525_v10, %v1159_v34 }
 0x4c7   :  { %v1356_v16 = vsub.f32 %v517_v27, %v533_v12 }
 0x4c9   :  { %v541_v18 = vmul.f32 %v1356_v16, %v1356_v16 }
 0x4cb   :  { %v547_v47 = vsel %vm104_vm1, %v541_v18, 0.0 }
 0x4d5   :  { %551 = vadd.xlane.f32.xlu1 %v550_v3 }
 0x4e5   :  { %v653_v22 = vpop.permute.xlu2 %652 }
 0x4e6   :  { %v664_v58 = vsel %vm104_vm1, %v653_v22, 0.0 }
 0x4ed   :  { %554 = vadd.xlane.f32.xlu0 %v553_v17 }
 0x4f5   :  { %548 = vadd.xlane.f32.xlu0 %v547_v47 }
 0x51d   :  { %v657_v19 = vpop.permute.xlu1 %656 }
 0x51e   :  { %v670_v21 = vsel %vm104_vm1, %v657_v19, 0.0 }
 0x51f   :  { %671 = vadd.xlane.f32.xlu2 %v670_v21 }
 0x527   :  { %v546_v23 = vpop.xlane.xlu2 %545 }
 0x528   :  { %v556_v25 = vmul.f32 %v546_v23, %v1159_v34 }
 0x52a   :  { %v1376_v32 = vadd.f32 1e-05, %v556_v25 }
 0x52c   :  { %vm570_vm12 = vweird.f32 %v1376_v32 }
 0x52d   :  { %v659_v4 = vpop.permute.xlu0 %658 }
 0x52e   :  { %v673_v37 = vsel %vm104_vm1, %v659_v4, 0.0 }
 0x52f   :  { %674 = vadd.xlane.f32.xlu1 %v673_v37 }
 0x535   :  { %v655_v54 = vpop.permute.xlu0 %654 }
 0x536   :  { %v667_v20 = vsel %vm104_vm1, %v655_v54, 0.0 }
 0x537   :  { %665 = vadd.xlane.f32.xlu1 %v664_v58  ;;  %668 = vadd.xlane.f32.xlu2 %v667_v20 }
 0x548   :  { %v552_v24 = vpop.xlane.xlu1 %551 }
 0x549   :  { %v558_v48 = vmul.f32 %v552_v24, %v1159_v34 }
 0x54b   :  { %v562_v28 = vadd.f32 1e-05, %v558_v48 }
 0x54d   :  { %1032 = vrsqrt.f32 %v562_v28  ;;  %vm590_vm3 = vweird.f32 %v562_v28 }
 0x553   :  { %v1374_v15 = vpop.eup %1032 }
 0x554   :  { %v585_v41 = vmul.f32 %v1374_v15, %v562_v28  ;;  %vm591_vm14 = vweird.f32 %v1374_v15 }
 0x555   :  { %vm592_vm4 = vmor %vm590_vm3, %vm591_vm14 }
 0x556   :  { %v586_v42 = vmul.f32 %v1374_v15, %v585_v41 }
 0x558   :  { %v587_v53 = vmul.f32 0.5, %v586_v42 }
 0x55a   :  { %v588_v62 = vsub.f32 1.5, %v587_v53 }
 0x55c   :  { %v589_v19 = vmul.f32 %v1374_v15, %v588_v62 }
 0x55e   :  { %v593_v58 = vsel %vm592_vm4, %v1374_v15, %v589_v19 }
 0x560   :  { %v555_v26 = vpop.xlane.xlu0 %554 }
 0x561   :  { %v559_v27 = vmul.f32 %v555_v26, %v1159_v34 }
 0x563   :  { %v1369_v30 = vadd.f32 1e-05, %v559_v27 }
 0x565   :  { %vm600_vm6 = vweird.f32 %v1369_v30 }
 0x568   :  { %v549_v31 = vpop.xlane.xlu0 %548 }
 0x569   :  { %v557_v11 = vmul.f32 %v549_v31, %v1159_v34 }
 0x56b   :  { %v1381_v35 = vadd.f32 1e-05, %v557_v11 }
 0x592   :  { %v672_v9 = vpop.xlane.xlu2 %671 }
 0x593   :  { %v678_v29 = vmul.f32 %v672_v9, %v1159_v34 }
 0x595   :  { %v682_v13 = vadd.f32 1e-05, %v678_v29  ;;  %v606_v29 = vmul.f32 %v593_v58, %v1345_v1 }
 0x597   :  { %1034 = vrsqrt.f32 %v682_v13  ;;  %vm710_vm15 = vweird.f32 %v682_v13 }
 0x598   :  { %1036 = vrsqrt.f32 %v1369_v30 }
 0x599   :  { %1038 = vrsqrt.f32 %v1376_v32 }
 0x59a   :  { %1040 = vrsqrt.f32 %v1381_v35 }
 0x59d   :  { %v1035_v63 = vpop.eup %1034 }
 0x59e   :  { %v1378_v33 = vpop.eup %1036  ;;  %v705_v36 = vmul.f32 %v1035_v63, %v682_v13  ;;  %vm711_vm13 = vweird.f32 %v1035_v63 }
 0x59f   :  { %v595_v40 = vmul.f32 %v1378_v33, %v1369_v30  ;;  %v1390_v52 = vpop.eup %1038  ;;  %vm712_vm2 = vmor %vm710_vm15, %vm711_vm13  ;;  %vm601_vm5 = vweird.f32 %v1378_v33 }
 0x5a0   :  { %v706_v39 = vmul.f32 %v1035_v63, %v705_v36  ;;  %v1392_v55 = vpop.eup %1040  ;;  %v565_v59 = vmul.f32 %v1390_v52, %v1376_v32  ;;  %vm1415_vm7 = vmor %vm600_vm6, %vm601_vm5  ;;  %vm571_vm11 = vweird.f32 %v1390_v52 }
 0x5a1   :  { %v596_v49 = vmul.f32 %v1378_v33, %v595_v40  ;;  %v575_v3 = vmul.f32 %v1392_v55, %v1381_v35  ;;  %vm581_vm13 = vweird.f32 %v1392_v55  ;;  %vm1438_vm14 = vmor %vm570_vm12, %vm571_vm11  ;;  %vm873_vm12 = vcmask 654336  }
 0x5a2   :  { %v675_v43 = vpop.xlane.xlu1 %674  ;;  %v707_v45 = vmul.f32 0.5, %v706_v39  ;;  %v566_v14 = vmul.f32 %v1390_v52, %v565_v59 }
 0x5a3   :  { %v679_v44 = vmul.f32 %v675_v43, %v1159_v34  ;;  %v597_v61 = vmul.f32 0.5, %v596_v49  ;;  %v576_v4 = vmul.f32 %v1392_v55, %v575_v3  ;;  %v737_v43 = vperm.slane %v1128_v6, 6 }
 0x5a4   :  { %v708_v57 = vsub.f32 1.5, %v707_v45  ;;  %v567_v22 = vmul.f32 0.5, %v566_v14 }
 0x5a5   :  { %v683_v51 = vadd.f32 1e-05, %v679_v44  ;;  %v598_v17 = vsub.f32 1.5, %v597_v61  ;;  %v577_v23 = vmul.f32 0.5, %v576_v4 }
 0x5a6   :  { %v709_v10 = vmul.f32 %v1035_v63, %v708_v57  ;;  %v568_v28 = vsub.f32 1.5, %v567_v22  ;;  %v997_v22 = vld [vmem:[%s1497_s5] sm:$0xff] }
 0x5a7   :  { %1042 = vrsqrt.f32 %v683_v51  ;;  %v599_v54 = vmul.f32 %v1378_v33, %v598_v17  ;;  %vm720_vm9 = vweird.f32 %v683_v51  ;;  %v578_v25 = vsub.f32 1.5, %v577_v23 }
 0x5a9   :  { %v603_v9 = vsel %vm1415_vm7, %v1378_v33, %v599_v54  ;;  %v569_v33 = vmul.f32 %v1390_v52, %v568_v28  ;;  %v579_v44 = vmul.f32 %v1392_v55, %v578_v25 }
 0x5aa   :  { %v666_v0 = vpop.xlane.xlu1 %665  ;;  %v669_v2 = vpop.xlane.xlu2 %668  ;;  %v607_v36 = vmul.f32 %v603_v9, %v1351_v8 }
 0x5ab   :  { %v676_v5 = vmul.f32 %v666_v0, %v1159_v34  ;;  %v677_v7 = vmul.f32 %v669_v2, %v1159_v34  ;;  %v713_v34 = vsel %vm712_vm2, %v1035_v63, %v709_v10  ;;  %vm580_vm2 = vweird.f32 %v1381_v35 }
 0x5ac   :  { %v726_v24 = vmul.f32 %v713_v34, %v1322_v46  ;;  %v732_v46 = vperm.slane %v1128_v6, 5  ;;  %v573_v6 = vsel %vm1438_vm14, %v1390_v52, %v569_v33  ;;  %vm582_vm4 = vmor %vm580_vm2, %vm581_vm13  ;;  %v998_v34 = vld [vmem:[%s1497_s5 + $0x8] sm:$0xff]  ;;  %v1059_v33 = vmov 63.0  }
 0x5ad   :  { %v1043_v12 = vpop.eup %1042  ;;  %v1401_v18 = vadd.f32 1e-05, %v676_v5  ;;  %v1403_v47 = vadd.f32 1e-05, %v677_v7  ;;  %v583_v61 = vsel %vm582_vm4, %v1392_v55, %v579_v44  ;;  %v604_v52 = vmul.f32 %v573_v6, %v1326_v50  ;;  %v1000_v50 = vld [vmem:[%s1496_s6 + $0x8] sm:$0xff] }
 0x5ae   :  { %v715_v21 = vmul.f32 %v1043_v12, %v683_v51  ;;  %vm721_vm8 = vweird.f32 %v1043_v12  ;;  %v730_v15 = vsel %vm104_vm1, %v606_v29, %v726_v24  ;;  %v605_v5 = vmul.f32 %v583_v61, %v1356_v16 }
 0x5af   :  { %1044 = vrsqrt.f32 %v1401_v18  ;;  %vm722_vm10 = vmor %vm720_vm9, %vm721_vm8  ;;  %v735_v42 = vmul.f32 %v732_v46, %v730_v15  ;;  %vm690_vm5 = vweird.f32 %v1401_v18  ;;  %vm700_vm7 = vweird.f32 %v1403_v47 }
 0x5b0   :  { %v716_v37 = vmul.f32 %v1043_v12, %v715_v21  ;;  %1046 = vrsqrt.f32 %v1403_v47  ;;  %vm831_vm9 = vcmask 517120   ;;  %vm875_vm13 = vcmask 662528  }
 0x5b1   :  { %v740_v57 = vadd.f32 %v737_v43, %v735_v42 }
 0x5b2   :  { %v717_v20 = vmul.f32 0.5, %v716_v37  ;;  %v1057_v37 = vmov 64.0  }
 0x5b3   :  { %1048 = vrcp.f32 %v1057_v37 }
 0x5b4   :  { %v718_v26 = vsub.f32 1.5, %v717_v20  ;;  %1050 = vrcp.f32 %v1059_v33 }
 0x5b5   :  { %v1045_v27 = vpop.eup %1044 }
 0x5b6   :  { %v1047_v13 = vpop.eup %1046  ;;  %v719_v31 = vmul.f32 %v1043_v12, %v718_v26  ;;  %v685_v30 = vmul.f32 %v1045_v27, %v1401_v18  ;;  %vm691_vm15 = vweird.f32 %v1045_v27 }
 0x5b7   :  { %v695_v11 = vmul.f32 %v1047_v13, %v1403_v47  ;;  %vm701_vm3 = vweird.f32 %v1047_v13  ;;  %vm692_vm6 = vmor %vm690_vm5, %vm691_vm15  ;;  %vm877_vm15 = vcmask 670720  }
 0x5b8   :  { %v723_v63 = vsel %vm722_vm10, %v1043_v12, %v719_v31  ;;  %v686_v41 = vmul.f32 %v1045_v27, %v685_v30  ;;  %vm702_vm8 = vmor %vm700_vm7, %vm701_vm3 }
 0x5b9   :  { %v696_v1 = vmul.f32 %v1047_v13, %v695_v11  ;;  %v727_v39 = vmul.f32 %v723_v63, %v1333_v56  ;;  %v1049_v54 = vpop.eup %1048 }
 0x5ba   :  { %v687_v40 = vmul.f32 0.5, %v686_v41  ;;  %v836_v58 = vmul.f32 64.0, %v1049_v54  ;;  %vm840_vm10 = vweird.f32 %v1049_v54 }
 0x5bb   :  { %v697_v45 = vmul.f32 0.5, %v696_v1  ;;  %v731_v49 = vsel %vm104_vm1, %v607_v36, %v727_v39  ;;  %v1051_v1 = vpop.eup %1050 }
 0x5bc   :  { %v688_v56 = vsub.f32 1.5, %v687_v40  ;;  %v736_v8 = vmul.f32 %v732_v46, %v731_v49  ;;  %v837_v20 = vsub.f32 1.0, %v836_v58  ;;  %v849_v36 = vmul.f32 63.0, %v1051_v1 }
 0x5bd   :  { %v698_v32 = vsub.f32 1.5, %v697_v45 }
 0x5be   :  { %v689_v53 = vmul.f32 %v1045_v27, %v688_v56  ;;  %v741_v59 = vadd.f32 %v737_v43, %v736_v8  ;;  %v838_v23 = vmul.f32 %v1049_v54, %v837_v20  ;;  %v850_v39 = vsub.f32 1.0, %v849_v36 }
 0x5bf   :  { %v699_v62 = vmul.f32 %v1047_v13, %v698_v32 }
 0x5c0   :  { %v693_v0 = vsel %vm692_vm6, %v1045_v27, %v689_v53  ;;  %v744_v2 = vpack.c.bf16 %v741_v59, %v740_v57  ;;  %v839_v24 = vadd.f32 %v1049_v54, %v838_v23  ;;  %v851_v40 = vmul.f32 %v1051_v1, %v850_v39 }
 0x5c1   :  { %v724_v35 = vmul.f32 %v693_v0, %v1315_v38  ;;  %v703_v3 = vsel %vm702_vm8, %v1047_v13, %v699_v62  ;;  %v742_v38 = vld [vmem:[%s1495_s1] sm:$0x1] }
 0x5c2   :  { %v725_v7 = vmul.f32 %v703_v3, %v1339_v60  ;;  %754 = vmatpush.bf16.msra.mxu3 %v744_v2  ;;  %v999_v60 = vld [vmem:[%s1496_s6] sm:$0xff]  ;;  %v841_v48 = vsel %vm840_vm10, %v1049_v54, %v839_v24  ;;  %v852_v42 = vadd.f32 %v1051_v1, %v851_v40 }
 0x5c3   :  { %v728_v10 = vsel %vm104_vm1, %v604_v52, %v724_v35 }
 0x5c4   :  { %v729_v55 = vsel %vm104_vm1, %v605_v5, %v725_v7  ;;  %v733_v12 = vmul.f32 %v732_v46, %v728_v10 }
 0x5c5   :  { %v734_v14 = vmul.f32 %v732_v46, %v729_v55  ;;  %v1054_v46 = vld [vmem:[%s1492_s7] sm:$0xff] }
 0x5c6   :  { %v738_v17 = vadd.f32 %v737_v43, %v733_v12  ;;  %v829_v25 = vperm.slane %v1054_v46, 7 }
 0x5c7   :  { %v739_v18 = vadd.f32 %v737_v43, %v734_v14 }
 0x5c9   :  { %v743_v47 = vpack.c.bf16 %v739_v18, %v738_v17 }
 0x5cb   :  { %755 = vmatpush.bf16.msra.mxu3 %v743_v47 }
 0x5ce   :  { %960 = vmatmul.msk.bf16.vlgmr.msra.gmra.mxu3 %vm104_vm1, %v742_v38 }
 0x5cf   :  { %794 = vmatpush.bf16.msrb.mxu3 %v1000_v50 }
 0x5d3   :  { %795 = vmatpush.bf16.msrb.mxu3 %v999_v60 }
 0x5d7   :  { %822 = vmatpush.bf16.msra.mxu3 %v998_v34 }
 0x5db   :  { %823 = vmatpush.bf16.msra.mxu3 %v997_v22 }
 0x651   :  { %v1465_v16 = vpop.f32.mrf.mxu3 }
 0x652   :  { %v832_v19 = vsel %vm831_vm9, %v1465_v16, 0.0  ;;  %v761_v21 = vpack.c.bf16 %v1465_v16, %v1465_v16 }
 0x653   :  { %833 = vadd.xlane.f32.xlu1 %v832_v19 }
 0x654   :  { %771 = vrot.lane.b32.xlu0 %v761_v21, %s1055_s2 }
 0x659   :  { %v759_v4 = vpop.f32.mrf.mxu3 }
 0x6c6   :  { %v834_v26 = vpop.xlane.xlu1 %833  ;;  %v772_v27 = vpop.permute.xlu0 %771 }
 0x6c7   :  { %v842_v28 = vmul.f32 %v841_v48, %v834_v26  ;;  %969 = vmatmul.msk.bf16.vlgmr.msrb.gmra.mxu3 %vm104_vm1, %v772_v27 }
 0x6c9   :  { %v843_v9 = vsub.f32 %v1465_v16, %v842_v28 }
 0x6cb   :  { %v844_v29 = vmul.f32 %v843_v9, %v843_v9 }
 0x6cd   :  { %v845_v13 = vsel %vm831_vm9, %v844_v29, 0.0 }
 0x6ce   :  { %846 = vadd.xlane.f32.xlu2 %v845_v13 }
 0x6d7   :  { %978 = vmatmul.msk.bf16.vlgmr.msra.gmra.mxu3 %vm104_vm1, %v761_v21  ;;  %vm853_vm1 = vweird.f32 %v1051_v1 }
 0x6d8   :  { %v854_v43 = vsel %vm853_vm1, %v1051_v1, %v852_v42 }
 0x741   :  { %v847_v44 = vpop.xlane.xlu2 %846 }
 0x742   :  { %v855_v45 = vmul.f32 %v854_v43, %v847_v44 }
 0x744   :  { %1052 = vrsqrt.f32 %v855_v45  ;;  %vm863_vm11 = vcmp.eq.f32.partialorder %v855_v45, inf  ;;  %v866_v59 = vand.u32 2147483648, %v855_v45  ;;  %vm865_vm14 = vcmp.eq.f32.partialorder %v855_v45, 0.0 }
 0x74a   :  { %v797_v31 = vpop.f32.mrf.mxu3  ;;  %v1053_v49 = vpop.eup %1052 }
 0x74b   :  { %v857_v51 = vmul.f32 %v1053_v49, %v855_v45 }
 0x74d   :  { %v858_v56 = vmul.f32 %v1053_v49, %v857_v51 }
 0x74f   :  { %v859_v8 = vmul.f32 0.5, %v858_v56 }
 0x751   :  { %v860_v6 = vsub.f32 1.5, %v859_v8 }
 0x752   :  { %v799_v30 = vpop.f32.mrf.mxu3 }
 0x753   :  { %v861_v32 = vmul.f32 %v1053_v49, %v860_v6 }
 0x755   :  { %v862_v53 = vmul.f32 %v861_v32, %v855_v45 }
 0x757   :  { %v864_v57 = vsel %vm863_vm11, %v855_v45, %v862_v53 }
 0x758   :  { %v867_v0 = vsel %vm865_vm14, %v866_v59, %v864_v57 }
 0x75a   :  { %v825_v11 = vpop.f32.mrf.mxu3 }
 0x75b   :  { %v826_v15 = vadd.f32 %v825_v11, %v797_v31 }
 0x75d   :  { %v830_v63 = vadd.f32 %v829_v25, %v826_v15 }
 0x75f   :  { %869 = vrot.lane.b32.xlu1 %v830_v63, %s1058_s25 }
 0x762   :  { %v827_v41 = vpop.f32.mrf.mxu3 }
 0x7d1   :  { %v870_v61 = vpop.permute.xlu1 %869 }
 0x7d2   :  { %v872_v62 = vsel %vm78_vm0, %v1465_v16, %v870_v61 }
 0x7d3   :  { %v874_v2 = vsel %vm873_vm12, %v872_v62, %v842_v28 }
 0x7d4   :  { %v876_v52 = vsel %vm875_vm13, %v874_v2, %v867_v0 }
 0x7d5   :  { %v878_v35 = vsel %vm877_vm15, %v876_v52, 0.0 }
 0x7d6   :  { %879 = vst [vmem:[%s1498_s8] sm:$0x3] %v878_v35 }

</bundles_post_ra>
